<compile_context>
chip_gen: v7x
topology: tpu7x:2x2x1
jax: 0.10.0
libtpu: 0.0.40
codegen_flags: <defaults>
</compile_context>

<pallas_src>
import jax
import jax.numpy as jnp
from jax.experimental import pallas as pl
from jax.experimental.pallas import tpu as pltpu


def _qkv_proj_kernel(x_ref, w_ref, qkv_ref):
    # Single fused projection: (blk, d_in_p) @ (d_in_p, 3*d_out_p) on the MXU,
    # bf16 operands, f32 accumulation, lane-dense bf16 output.
    x = x_ref[0].astype(jnp.bfloat16)
    w = w_ref[...]                                            # already bf16
    qkv_ref[0] = jnp.dot(x, w, preferred_element_type=jnp.float32).astype(
        qkv_ref.dtype)


def _flash_attn_kernel(q_ref, k_ref, v_ref, o_ref, m_sc, l_sc, acc_sc):
    qi = pl.program_id(1)
    ki = pl.program_id(2)
    blk_q = q_ref.shape[1]
    blk_k = k_ref.shape[1]

    @pl.when(ki == 0)
    def _init():
        m_sc[...] = jnp.full_like(m_sc, -jnp.inf)
        l_sc[...] = jnp.zeros_like(l_sc)
        acc_sc[...] = jnp.zeros_like(acc_sc)

    def _update(need_mask):
        # Scale (1/sqrt(d_out)) is already folded into W_query, so q is ready.
        q = q_ref[0]                                          # (blk_q, d) bf16
        k = k_ref[0]                                          # (blk_k, d) bf16
        # Contract last dims directly -- no k.T relayout through the XLU.
        s = jax.lax.dot_general(
            q, k, (((1,), (1,)), ((), ())),
            preferred_element_type=jnp.float32)               # (blk_q, blk_k) f32

        if need_mask:
            # Diagonal tile only (qi == ki, blk_q == blk_k): local iota compare,
            # no tile-offset adds needed.
            row = jax.lax.broadcasted_iota(jnp.int32, (blk_q, blk_k), 0)
            col = jax.lax.broadcasted_iota(jnp.int32, (blk_q, blk_k), 1)
            s = jnp.where(col > row, -jnp.inf, s)

        # Online softmax update (f32).
        m_prev = m_sc[...]
        m_new = jnp.maximum(m_prev, jnp.max(s, axis=-1, keepdims=True))
        alpha = jnp.exp(m_prev - m_new)
        p = jnp.exp(s - m_new)
        l_sc[...] = alpha * l_sc[...] + jnp.sum(p, axis=-1, keepdims=True)
        pv = jnp.dot(p.astype(jnp.bfloat16), v_ref[0],
                     preferred_element_type=jnp.float32)
        acc_sc[...] = alpha * acc_sc[...] + pv
        m_sc[...] = m_new

    # Strictly-below-diagonal tiles: no mask work at all.
    @pl.when(ki < qi)
    def _interior():
        _update(need_mask=False)

    # Diagonal tile: apply the causal mask.
    @pl.when(ki == qi)
    def _diag():
        _update(need_mask=True)

    # Tiles with ki > qi are skipped entirely (and not even re-DMA'd, because the
    # k/v index_maps clamp to min(ki, qi)).

    @pl.when(ki == pl.num_programs(2) - 1)
    def _finalize():
        # Divide via approximate reciprocal on the EUP slot.
        inv_l = pl.reciprocal(l_sc[...], approx=True)
        o_ref[0] = (acc_sc[...] * inv_l).astype(o_ref.dtype)


def causal_attention_with_buffer(x, w_query, w_key, w_value, *, blk=128):
    """x: (B, T, d_in) float32; w_*: (d_in, d_out) float32 (transpose of PyTorch's)."""
    assert blk % 128 == 0, "tile size must be a multiple of 128"
    B, T, d_in = x.shape
    d_out = w_query.shape[1]
    scale = 1.0 / (float(d_out) ** 0.5)

    # Pad to lane-dense, (8,128)-aligned shapes.
    d_in_p = pl.cdiv(d_in, 128) * 128
    d_out_p = pl.cdiv(d_out, 128) * 128
    Tp = pl.cdiv(T, blk) * blk
    nt = Tp // blk

    x_p = jnp.zeros((B, Tp, d_in_p), jnp.float32).at[:, :T, :d_in].set(
        x.astype(jnp.float32))

    def _pad_w(w, s=1.0):
        return jnp.zeros((d_in_p, d_out_p), jnp.float32).at[:d_in, :d_out].set(
            w.astype(jnp.float32) * s)

    # Fused QKV weight: (d_in_p, 3*d_out_p); q|k|v occupy lane-block 0|1|2.
    # Softmax scale folded into W_query; stored bf16 (MXU operand dtype anyway).
    w_qkv = jnp.concatenate(
        [_pad_w(w_query, scale), _pad_w(w_key), _pad_w(w_value)],
        axis=1).astype(jnp.bfloat16)

    # ---- Stage 1: fused QKV projection -------------------------------------
    qkv = pl.pallas_call(
        _qkv_proj_kernel,
        out_shape=jax.ShapeDtypeStruct((B, Tp, 3 * d_out_p), jnp.bfloat16),
        grid=(B, nt),
        in_specs=[
            pl.BlockSpec((1, blk, d_in_p), lambda b, i: (b, i, 0)),
            pl.BlockSpec((d_in_p, 3 * d_out_p), lambda b, i: (0, 0)),
        ],
        out_specs=pl.BlockSpec((1, blk, 3 * d_out_p), lambda b, i: (b, i, 0)),
        compiler_params=pltpu.CompilerParams(
            dimension_semantics=("parallel", "parallel")),
    )(x_p, w_qkv)

    # ---- Stage 2: flash-style causal attention ------------------------------
    # q, k, v are views into qkv via the last-dim block index of the BlockSpec.
    # k/v block index clamps at the diagonal so skipped (ki > qi) iterations do
    # not trigger fresh DMAs.
    out_p = pl.pallas_call(
        _flash_attn_kernel,
        out_shape=jax.ShapeDtypeStruct((B, Tp, d_out_p), jnp.float32),
        grid=(B, nt, nt),
        in_specs=[
            pl.BlockSpec((1, blk, d_out_p),
                         lambda b, qi, ki: (b, qi, 0)),                      # q
            pl.BlockSpec((1, blk, d_out_p),
                         lambda b, qi, ki: (b, jnp.minimum(ki, qi), 1)),     # k
            pl.BlockSpec((1, blk, d_out_p),
                         lambda b, qi, ki: (b, jnp.minimum(ki, qi), 2)),     # v
        ],
        out_specs=pl.BlockSpec((1, blk, d_out_p), lambda b, qi, ki: (b, qi, 0)),
        scratch_shapes=[
            pltpu.VMEM((blk, 1), jnp.float32),        # running max m
            pltpu.VMEM((blk, 1), jnp.float32),        # running denom l
            pltpu.VMEM((blk, d_out_p), jnp.float32),  # output accumulator
        ],
        compiler_params=pltpu.CompilerParams(
            dimension_semantics=("parallel", "parallel", "arbitrary")),
    )(qkv, qkv, qkv)

    return out_p[:, :T, :d_out]


def _reference(x, wq, wk, wv):
    q = x @ wq
    k = x @ wk
    v = x @ wv
    s = jnp.einsum("btd,bsd->bts", q, k)
    T = x.shape[1]
    mask = jnp.triu(jnp.ones((T, T), dtype=bool), k=1)
    s = jnp.where(mask[None], -jnp.inf, s)
    w = jax.nn.softmax(s / (k.shape[-1] ** 0.5), axis=-1)
    return w @ v


if __name__ == "__main__":
    # ---- Test 1: exact shapes from the original script ----------------------
    # context_length = 6, d_in = 3, d_out = 2, batch of 2 identical sequences.
    d_in, d_out = 3, 2
    inputs = jnp.array([[0.43, 0.15, 0.89],
                        [0.55, 0.87, 0.66],
                        [0.57, 0.85, 0.64],
                        [0.22, 0.58, 0.33],
                        [0.77, 0.25, 0.10],
                        [0.05, 0.80, 0.55]], dtype=jnp.float32)
    x = jnp.stack([inputs, inputs], axis=0)          # (2, 6, 3)
    B, T, _ = x.shape

    key = jax.random.PRNGKey(0)
    kq, kk, kv, kx2, kq2, kk2, kv2 = jax.random.split(key, 7)
    # Deterministic "Linear" weights, stored as (d_in, d_out) (transpose of PyTorch's).
    w_query = jax.random.normal(kq, (d_in, d_out), dtype=jnp.float32) * 0.5
    w_key   = jax.random.normal(kk, (d_in, d_out), dtype=jnp.float32) * 0.5
    w_value = jax.random.normal(kv, (d_in, d_out), dtype=jnp.float32) * 0.5

    out = causal_attention_with_buffer(x, w_query, w_key, w_value)
    out = jax.block_until_ready(out)
    ref = _reference(x, w_query, w_key, w_value)
    assert out.shape == (B, T, d_out)
    # bf16 MXU operands + approximate reciprocal -> compare with a loose tolerance.
    assert jnp.allclose(out, ref, atol=5e-2, rtol=5e-2), "mismatch vs reference (T=6)"

    # ---- Test 2: multi-tile sequence (exercises causal tile skipping / padding) --
    B2, T2, d_in2, d_out2 = 2, 300, 16, 8
    x2 = jax.random.uniform(kx2, (B2, T2, d_in2), dtype=jnp.float32)
    wq2 = jax.random.normal(kq2, (d_in2, d_out2), dtype=jnp.float32) * 0.3
    wk2 = jax.random.normal(kk2, (d_in2, d_out2), dtype=jnp.float32) * 0.3
    wv2 = jax.random.normal(kv2, (d_in2, d_out2), dtype=jnp.float32) * 0.3

    out2 = causal_attention_with_buffer(x2, wq2, wk2, wv2)
    out2 = jax.block_until_ready(out2)
    ref2 = _reference(x2, wq2, wk2, wv2)
    assert out2.shape == (B2, T2, d_out2)
    assert jnp.allclose(out2, ref2, atol=5e-2, rtol=5e-2), "mismatch vs reference (T=300)"

    print("KERNEL_OK")
</pallas_src>

<mosaic_0001>
module attributes {stable_mosaic.version = 11 : i64} {
  func.func @_qkv_proj_kernel(%arg0: i32, %arg1: i32, %arg2: memref<1x128x128xf32, #tpu.memory_space<vmem>>, %arg3: memref<128x384xbf16, #tpu.memory_space<vmem>>, %arg4: memref<1x128x384xbf16, #tpu.memory_space<vmem>>) attributes {dimension_semantics = [#tpu.dimension_semantics<parallel>, #tpu.dimension_semantics<parallel>], iteration_bounds = array<i64: 2, 1>, scalar_prefetch = 0 : i64, scratch_operands = 0 : i64, tpu.core_type = #tpu.core_type<tc>, window_params = [{transform_indices = @transform_0, window_bounds = array<i64: 1, 128, 128>}, {pipeline_mode = #tpu.pipeline_mode<synchronous>, transform_indices = @transform_1, window_bounds = array<i64: 128, 384>}, {transform_indices = @transform_2, window_bounds = array<i64: 1, 128, 384>}]} {
    %c0 = arith.constant 0 : index
    %c0_0 = arith.constant 0 : index
    %c0_1 = arith.constant 0 : index
    %0 = vector.load %arg2[%c0, %c0_0, %c0_1] : memref<1x128x128xf32, #tpu.memory_space<vmem>>, vector<1x128x128xf32>
    %1 = vector.shape_cast %0 : vector<1x128x128xf32> to vector<128x128xf32>
    %2 = arith.truncf %1 : vector<128x128xf32> to vector<128x128xbf16>
    %c0_2 = arith.constant 0 : index
    %c0_3 = arith.constant 0 : index
    %3 = vector.load %arg3[%c0_2, %c0_3] : memref<128x384xbf16, #tpu.memory_space<vmem>>, vector<128x384xbf16>
    %cst = arith.constant dense<0.000000e+00> : vector<128x384xf32>
    %4 = tpu.matmul %2, %3, %cst {dimension_numbers = #tpu.dot_dimension_numbers<[1], [0], [0], [1], [0, 0, 1, 1], [], []>} : vector<128x128xbf16>, vector<128x384xbf16>, vector<128x384xf32> -> vector<128x384xf32>
    %5 = arith.truncf %4 : vector<128x384xf32> to vector<128x384xbf16>
    %c0_4 = arith.constant 0 : index
    %c0_5 = arith.constant 0 : index
    %c0_6 = arith.constant 0 : index
    %6 = vector.load %arg4[%c0_4, %c0_5, %c0_6] : memref<1x128x384xbf16, #tpu.memory_space<vmem>>, vector<1x128x384xbf16>
    %7 = vector.shape_cast %6 : vector<1x128x384xbf16> to vector<128x384xbf16>
    %8 = vector.shape_cast %5 : vector<128x384xbf16> to vector<1x128x384xbf16>
    tpu.vector_store %arg4[%c0_4, %c0_5, %c0_6], %8 {strides = array<i32>} : memref<1x128x384xbf16, #tpu.memory_space<vmem>>, vector<1x128x384xbf16>,
    return
  }
  func.func @transform_0(%arg0: i32, %arg1: i32) -> (i32, i32, i32) {
    %c0_i32 = arith.constant 0 : i32
    %c0_i32_0 = arith.constant 0 : i32
    return %arg0, %arg1, %c0_i32 : i32, i32, i32
  }
  func.func @transform_1(%arg0: i32, %arg1: i32) -> (i32, i32) {
    %c0_i32 = arith.constant 0 : i32
    %c0_i32_0 = arith.constant 0 : i32
    %c0_i32_1 = arith.constant 0 : i32
    return %c0_i32, %c0_i32_0 : i32, i32
  }
  func.func @transform_2(%arg0: i32, %arg1: i32) -> (i32, i32, i32) {
    %c0_i32 = arith.constant 0 : i32
    %c0_i32_0 = arith.constant 0 : i32
    return %arg0, %arg1, %c0_i32 : i32, i32, i32
  }
}

</mosaic_0001>

<bundles_post_ra>
// kernel: tpu_custom_call.1
= control target key start
LH: loop header
LB: loop body
LE: loop exit
PB: predicated region body
PF: predicated region fallthrough
CT: control target
= control target key end

     0   :  { %7 = vsyncpa [#allocation3], 0  ;;  %s1615_s0 = inlined_call_operand.hbm [shape: f32[2,128,128], index: 0, kind: input, shape index: {}]   ;;  %s1616_s1 = inlined_call_operand.hbm [shape: bf16[128,384], index: 1, kind: input, shape index: {}]   ;;  %s1617_s2 = inlined_call_operand.hbm [shape: bf16[2,128,384], index: 2, kind: output, shape index: {}]  }
   0x1   :  { %9 = vsyncpa [#allocation3 + $0x1], 0 }
   0x2   :  { %10 = vsyncpa [#allocation6], 0 }
   0x3   :  { %11 = vsyncpa [#allocation4], 0 }
   0x4   :  { %13 = vsyncpa [#allocation4 + $0x1], 0  ;;  %s1334_s9 = smov 0   ;;  %s1336_s10 = smov 0  }
   0x5   :  { %s1338_s11 = smov 0   ;;  %s1340_s12 = smov 0  }
   0x6   :  { %s1342_s13 = smov 0   ;;  %s1344_s14 = smov 0  }
   0x7 LB: > { %s898_s15 = sadd.s32 4294967295, %s1307_s14   ;;  %s899_s16 = sadd.s32 4294967294, %s1307_s14   ;;  %s1307_s14 = sphi %s1344_s14, %s19_s14   ;;  %s1303_s13 = sphi %s1342_s13, %s1641_s13   ;;  %s1299_s12 = sphi %s1340_s12, %s1640_s12   ;;  %s1295_s11 = sphi %s1338_s11, %s1639_s11   ;;  %s1291_s10 = sphi %s1336_s10, %s1638_s10   ;;  %s1287_s9 = sphi %s1334_s9, %s1637_s9  }
   0x8   : > { %p53_p0 = scmp.ne.s32.totalorder %s1291_s10, %s1287_s9  ;;  %p1368_p1 = scmp.eq.s32.totalorder %s898_s15, 0 }
   0x9   : > { %p1372_p2 = scmp.eq.s32.totalorder %s898_s15, 1  ;;  %p106_p3 = scmp.eq.s32.totalorder %s899_s16, 1 }
   0xa   : > { %s1622_s17 = scalar_select %p1368_p1, 1, 0 }
   0xb   : > { %s1623_s18 = scalar_select %p1372_p2, 1, 0 }
   0xc   : > { %p1378_p4 = por %p1368_p1, %p53_p0  ;;  %p900_p5 = scmp.ge.s32.totalorder %s1307_s14, 1 }
   0xd   : > { %p1383_p6 = por %p106_p3, %p53_p0  ;;  %p113_p7 = scmp.lt.s32.totalorder %s1307_s14, 3 }
   0xe   : > { %s1624_s19 = scalar_select %p1378_p4, 1, 0 }
   0xf   : > { %s1625_s20 = scalar_select %p1383_p6, 1, 0 }
  0x10   : > { %p1388_p8 = pnand %p900_p5, %p113_p7  ;;  %s1309_s22 = smov [#allocation5]  }
  0x11   : > { %s125_s23 = sshll.u32 %s1309_s22, 4  ;;  %s31_s25 = sadd.s32 1, %s1303_s13  ;;  %s126_s23 = int_to_ptr.vmem [resolvable:$true] %s125_s23 }
  0x12   : > { %s1626_s21 = scalar_select %p1388_p8, 1, 0 }
  0x13   : > { %p1059_p9 = pneg %p1388_p8  ;;  %s1163_s28 = scalar_lea.hbm %s1616_s1, 3072 }
  0x14   : > { %p1164_p12 = scmp.ne.s32.totalorder %s1616_s1, %s1163_s28  ;;  %p1170_p5 = scmp.lt.u32.totalorder %s1163_s28, %s1616_s1 }
  0x15   : > { %p1397_p11 = pnand %p1059_p9, %p1368_p1 }
  0x17   : > { %p1165_p13 = pneg %p1397_p11 }
  0x19   : > { %p1166_p0 = pnand %p1165_p13, %p1164_p12 }
  0x1b   : > { %p1167_p3 = pneg %p1166_p0 }
  0x1d   : > { %p1172_p7 = pnand %p1170_p5, %p1167_p3 }
  0x1f   : > { %1175 = shalt.err (!%p1172_p7)
}
  0x20   : > { %s1176_s5 = scalar_lea.vmem %s126_s23, 3072  ;;  %p1184_p1 = scmp.lt.s32.totalorder %s126_s23, %s126_s23 }
  0x21   : > { %p1177_p9 = scmp.ne.s32.totalorder %s126_s23, %s1176_s5  ;;  %p1185_p4 = scmp.lt.s32.totalorder %s1176_s5, %s1176_s5 }
  0x23   : > { %p1179_p10 = pnand %p1177_p9, %p1165_p13  ;;  %p1186_p8 = por %p1185_p4, %p1184_p1 }
  0x25   : > { %p1180_p6 = pneg %p1179_p10 }
  0x27   : > { %p1187_p2 = pnand %p1186_p8, %p1180_p6 }
  0x29   : > { %1190 = shalt.err (!%p1187_p2)
}
  0x2a   : > { %s1310_s6 = smov 192   ;;  %s1311_s7 = smov 12  }
  0x2b   : > { %1062 = dma.hbm_to_vmem [thread:$0]  (!%p1397_p11), %s1616_s1, 3072, %s126_s23, [#allocation6], %s1310_s6, %s1310_s6, %s1311_s7  }
  0x2c   : > { %p33_p1 = scmp.ge.s32.totalorder %s31_s25, 2  ;;  %s40_s16 = sadd.s32 1, %s1295_s11 }
  0x2d   : > { %p47_p2 = scmp.ne.s32.totalorder %s1295_s11, %s1291_s10  ;;  %p48_p4 = scmp.eq.s32.totalorder %s1307_s14, 0 }
  0x2e   : > { %s1643_s25 = smov (%p33_p1, %s31_s25), 0  ;;  %p1629_p8 = scmp.ne.s32.totalorder %s1623_s18, 0 }
  0x2f   : > { %p1424_p6 = por %p48_p4, %p47_p2  ;;  %s35_s24 = ssub.s32 %s1303_s13, %s1643_s25 }
  0x30   : > { %p1430_p10 = por %p1629_p8, %p47_p2  ;;  %p1072_p12 = scmp.lt.s32.totalorder %s1307_s14, 2 }
  0x31   : > { %p38_p11 = scmp.eq.s32.totalorder %s35_s24, 0  ;;  %s139_s23 = sand.u32 1, %s1295_s11  }
  0x32   : > { %s903_s27 = sshll.u32 %s139_s23, 7  ;;  %s968_s29 = sshll.u32 %s1303_s13, 11 }
  0x33   : > { %s1439_s28 = scalar_select %p38_p11, %s1295_s11, %s40_s16  }
  0x34   : > { %s1445_s4 = scalar_lea.hbm %s1615_s0, %s968_s29  ;;  %s143_s18 = scalar_lea.vmem [#allocation2], %s903_s27 }
  0x35   : > { %s152_s5 = sshll.u32 %s143_s18, 4  ;;  %p1451_p13 = pnand %p1072_p12, %p1424_p6  ;;  %s1447_s5 = int_to_ptr.vmem [resolvable:$true] %s152_s5 }
  0x36   : > { %s1455_s7 = scalar_lea.sflag [#allocation3], %s139_s23  ;;  %s1191_s8 = scalar_lea.hbm %s1445_s4, 2048 }
  0x37   : > { %p1192_p0 = scmp.ne.s32.totalorder %s1445_s4, %s1191_s8  ;;  %p1193_p3 = pneg %p1451_p13 }
  0x38   : > { %s1196_s22 = scalar_lea.hbm %s1615_s0, 4096  ;;  %p1197_p9 = scmp.lt.u32.totalorder %s1445_s4, %s1615_s0 }
  0x39   : > { %p1194_p5 = pnand %p1193_p3, %p1192_p0  ;;  %p1198_p1 = scmp.lt.u32.totalorder %s1196_s22, %s1191_s8 }
  0x3a   : > { %p1200_p4 = scmp.lt.u32.totalorder %s1191_s8, %s1445_s4 }
  0x3b   : > { %p1195_p7 = pneg %p1194_p5  ;;  %p1199_p2 = por %p1198_p1, %p1197_p9 }
  0x3d   : > { %p1201_p6 = por %p1200_p4, %p1199_p2 }
  0x3f   : > { %p1202_p8 = pnand %p1201_p6, %p1195_p7 }
  0x41   : > { %1205 = shalt.err (!%p1202_p8)
}
  0x42   : > { %s1206_s23 = scalar_lea.vmem %s1447_s5, 2048  ;;  %s1312_s29 = smov [#allocation2]  }
  0x43   : > { %p1207_p12 = scmp.ne.s32.totalorder %s1447_s5, %s1206_s23  ;;  %s1211_s30 = sshll.u32 %s1312_s29, 4  ;;  %s1212_s30 = int_to_ptr.vmem [resolvable:$false] %s1211_s30 }
  0x44   : > { %s1213_s3 = scalar_lea.vmem %s1212_s30, 4096  ;;  %p1214_p5 = scmp.lt.s32.totalorder %s1447_s5, %s1212_s30 }
  0x45   : > { %p1209_p11 = pnand %p1207_p12, %p1193_p3  ;;  %p1215_p9 = scmp.lt.s32.totalorder %s1213_s3, %s1206_s23 }
  0x47   : > { %p1210_p0 = pneg %p1209_p11  ;;  %p1216_p1 = por %p1215_p9, %p1214_p5 }
  0x49   : > { %p1217_p2 = pnand %p1216_p1, %p1210_p0 }
  0x4b   : > { %1220 = shalt.err (!%p1217_p2)
}
  0x4c   : > { %s1313_s18 = smov 128   ;;  %s1314_s8 = smov 8  }
  0x4d   : > { %1066 = dma.hbm_to_vmem [thread:$0]  (!%p1451_p13), %s1445_s4, 2048, %s1447_s5, %s1455_s7, %s1313_s18, %s1313_s18, %s1314_s8  }
  0x4e   : > { %p1632_p3 = scmp.ne.s32.totalorder %s1626_s21, 0 }
  0x4f   : > { %s1486_s15 = sand.u32 (!%p1632_p3), 1, %s1291_s10   ;;  %p1633_p7 = scmp.ne.s32.totalorder (!%p1632_p3), %s1624_s19, 0 }
  0x50   : > { %164 = sbr.rel (%p1632_p3) target bundleno = 412 (0x19c), region = 28  ;;  %s907_s16 = sshll.u32 (!%p1632_p3), %s1486_s15, 7 }
  0x51   : > { %s167_s22 = scalar_lea.sflag (!%p1632_p3), [#allocation3], %s1486_s15  ;;  %s1490_s24 = scalar_lea.vmem (!%p1632_p3), [#allocation2], %s907_s16 }
  0x57   : > { %1274 = dma.done.wait (%p1633_p7), %s167_s22, 2048  }
  0x58   : > { %1276 = vsyncadd (%p1633_p7), %s167_s22, 4294965248  ;;  %p1634_p13 = scmp.ne.s32.totalorder %s1622_s17, 0 }
  0x5a   : > { %1278 = dma.done.wait (%p1634_p13), [#allocation6], 3072  }
  0x5b   : > { %1280 = vsyncadd (%p1634_p13), [#allocation6], 4294964224  ;;  %v1315_v0 = vmov 0   ;;  %v1131_v1 = vld [vmem:[#allocation5 + $0x4] ss:$12 sps:$4 sm:$0xff]   ;;  %v199_v12 = vld [vmem:[%s1490_s24 + $0x8] sm:$0xff] }
  0x5c   : > { %414 = vmatprep.mubr.bf16.mxu0 %v1315_v0  ;;  %v1133_v2 = vld [vmem:[#allocation5] ss:$12 sps:$4 sm:$0xff]   ;;  %382 = vmatprep.subr.bf16.mxu0 %v1131_v1  ;;  %v1134_v3 = vld [vmem:[#allocation5 + $0x1c] ss:$12 sps:$4 sm:$0xff]   ;;  %v1136_v4 = vld [vmem:[#allocation5 + $0x18] ss:$12 sps:$4 sm:$0xff]  }
  0x5d   : > { %383 = vmatpush1.bf16.msra.mxu0 %v1133_v2  ;;  %v1137_v5 = vld [vmem:[#allocation5 + $0x34] ss:$12 sps:$4 sm:$0xff]   ;;  %v1139_v6 = vld [vmem:[#allocation5 + $0x30] ss:$12 sps:$4 sm:$0xff]   ;;  %v1140_v7 = vld [vmem:[#allocation5 + $0x4c] ss:$12 sps:$4 sm:$0xff]  }
  0x5e   : > { %384 = vmatprep.subr.bf16.mxu0 %v1134_v3  ;;  %v1142_v8 = vld [vmem:[#allocation5 + $0x48] ss:$12 sps:$4 sm:$0xff]   ;;  %v1143_v9 = vld [vmem:[#allocation5 + $0x64] ss:$12 sps:$4 sm:$0xff]   ;;  %v1156_v13 = vld [vmem:[#allocation5 + $0x20] ss:$12 sps:$4 sm:$0xff]  }
  0x5f   : > { %v1155_v10 = vld [vmem:[#allocation5 + $0x8] ss:$12 sps:$4 sm:$0xff]   ;;  %v198_v11 = vld [vmem:[%s1490_s24] sm:$0xff]  ;;  %v1158_v19 = vld [vmem:[#allocation5 + $0x50] ss:$12 sps:$4 sm:$0xff]   ;;  %s1049_s17 = smul.u32 192, %s1486_s15 }
  0x60   : > { %1017 = vmatprep.subr.bf16.mxu1 %v1155_v10  ;;  %v1145_v14 = vld [vmem:[#allocation5 + $0x60] ss:$12 sps:$4 sm:$0xff]   ;;  %v214_v15 = vpack.c.bf16 %v199_v12, %v198_v11  ;;  %v1157_v16 = vld [vmem:[#allocation5 + $0x38] ss:$12 sps:$4 sm:$0xff]   ;;  %v1146_v17 = vld [vmem:[#allocation5 + $0x7c] ss:$12 sps:$4 sm:$0xff]  }
  0x61   : > { %385 = vmatpush1.bf16.msra.mxu0 %v1136_v4  ;;  %1018 = vmatpush3.bf16.msra.mxu1 %v1155_v10  ;;  %v1148_v18 = vld [vmem:[#allocation5 + $0x78] ss:$12 sps:$4 sm:$0xff]   ;;  %v1149_v20 = vld [vmem:[#allocation5 + $0x94] ss:$12 sps:$4 sm:$0xff]   ;;  %v1151_v21 = vld [vmem:[#allocation5 + $0x90] ss:$12 sps:$4 sm:$0xff]  }
  0x62   : > { %386 = vmatprep.subr.bf16.mxu0 %v1137_v5  ;;  %1019 = vmatprep.subr.bf16.mxu1 %v1156_v13  ;;  %v1159_v22 = vld [vmem:[#allocation5 + $0x68] ss:$12 sps:$4 sm:$0xff]   ;;  %v1152_v23 = vld [vmem:[#allocation5 + $0xac] ss:$12 sps:$4 sm:$0xff]   ;;  %v1162_v29 = vld [vmem:[#allocation5 + $0xb0] ss:$12 sps:$4 sm:$0xff]  }
  0x63   : > { %1033 = vmatprep.mubr.bf16.mxu1 %v214_v15  ;;  %v1154_v24 = vld [vmem:[#allocation5 + $0xa8] ss:$12 sps:$4 sm:$0xff]   ;;  %v1160_v25 = vld [vmem:[#allocation5 + $0x80] ss:$12 sps:$4 sm:$0xff]   ;;  %v1161_v26 = vld [vmem:[#allocation5 + $0x98] ss:$12 sps:$4 sm:$0xff]  }
  0x64   : > { %v200_v27 = vld [vmem:[%s1490_s24 + $0x10] sm:$0xff]  ;;  %v201_v28 = vld [vmem:[%s1490_s24 + $0x18] sm:$0xff]  ;;  %v202_v31 = vld [vmem:[%s1490_s24 + $0x20] sm:$0xff]  ;;  %s1525_s19 = scalar_lea.vmem [#allocation7], %s1049_s17  ;;  %s1050_s21 = smul.u32 3072, %s1299_s12 }
  0x65   : > { %387 = vmatpush1.bf16.msra.mxu0 %v1139_v6  ;;  %1020 = vmatpush3.bf16.msra.mxu1 %v1156_v13  ;;  %v215_v30 = vpack.c.bf16 %v201_v28, %v200_v27  ;;  %v203_v32 = vld [vmem:[%s1490_s24 + $0x28] sm:$0xff]  ;;  %v204_v34 = vld [vmem:[%s1490_s24 + $0x30] sm:$0xff]  ;;  %v205_v35 = vld [vmem:[%s1490_s24 + $0x38] sm:$0xff]  ;;  %s801_s4 = sshll.u32 %s1525_s19, 4  ;;  %s785_s12 = scalar_lea.sflag [#allocation4], %s1486_s15  ;;  %s1564_s4 = int_to_ptr.vmem [resolvable:$true] %s801_s4 }
  0x66   : > { %388 = vmatprep.subr.bf16.mxu0 %v1140_v7  ;;  %1021 = vmatprep.subr.bf16.mxu1 %v1157_v16  ;;  %v216_v33 = vpack.c.bf16 %v203_v32, %v202_v31  ;;  %v206_v36 = vld [vmem:[%s1490_s24 + $0x40] sm:$0xff]  ;;  %v207_v37 = vld [vmem:[%s1490_s24 + $0x48] sm:$0xff]  ;;  %v217_v38 = vpack.c.bf16 %v205_v35, %v204_v34  ;;  %v208_v40 = vld [vmem:[%s1490_s24 + $0x50] sm:$0xff]  ;;  %s1562_s7 = scalar_lea.hbm %s1617_s2, %s1050_s21  ;;  %s1221_s27 = scalar_lea.vmem %s1564_s4, 3072 }
  0x67   : > { %v218_v39 = vpack.c.bf16 %v207_v37, %v206_v36  ;;  %v209_v41 = vld [vmem:[%s1490_s24 + $0x58] sm:$0xff]  ;;  %v210_v42 = vld [vmem:[%s1490_s24 + $0x60] sm:$0xff]  ;;  %v211_v43 = vld [vmem:[%s1490_s24 + $0x68] sm:$0xff]  ;;  %p1222_p4 = scmp.ne.s32.totalorder %s1564_s4, %s1221_s27  ;;  %s1316_s23 = smov [#allocation7]  }
  0x68   : > { %v219_v44 = vpack.c.bf16 %v209_v41, %v208_v40  ;;  %v220_v45 = vpack.c.bf16 %v211_v43, %v210_v42  ;;  %v212_v46 = vld [vmem:[%s1490_s24 + $0x70] sm:$0xff]  ;;  %v213_v47 = vld [vmem:[%s1490_s24 + $0x78] sm:$0xff]  ;;  %s1225_s29 = sshll.u32 %s1316_s23, 4  ;;  %s1226_s29 = int_to_ptr.vmem [resolvable:$false] %s1225_s29 }
  0x69   : > { %389 = vmatpush1.bf16.msra.mxu0 %v1142_v8  ;;  %1022 = vmatpush3.bf16.msra.mxu1 %v1157_v16  ;;  %v221_v48 = vpack.c.bf16 %v213_v47, %v212_v46  ;;  %p1223_p6 = pnand %p1222_p4, %p1430_p10  ;;  %s1227_s30 = scalar_lea.vmem %s1226_s29, 6144 }
  0x6a   : > { %390 = vmatprep.subr.bf16.mxu0 %v1143_v9  ;;  %1023 = vmatprep.subr.bf16.mxu1 %v1158_v19  ;;  %p1228_p12 = scmp.lt.s32.totalorder %s1564_s4, %s1226_s29  ;;  %p1229_p11 = scmp.lt.s32.totalorder %s1227_s30, %s1221_s27 }
  0x6b   : > { %p1224_p8 = pneg %p1223_p6 }
  0x6c   : > { %p1230_p0 = por %p1229_p11, %p1228_p12 }
  0x6d   : > { %391 = vmatpush1.bf16.msra.mxu0 %v1145_v14  ;;  %1024 = vmatpush3.bf16.msra.mxu1 %v1158_v19 }
  0x6e   : > { %392 = vmatprep.subr.bf16.mxu0 %v1146_v17  ;;  %1025 = vmatprep.subr.bf16.mxu1 %v1159_v22  ;;  %p1231_p5 = pnand %p1230_p0, %p1224_p8 }
  0x71   : > { %393 = vmatpush1.bf16.msra.mxu0 %v1148_v18  ;;  %1026 = vmatpush3.bf16.msra.mxu1 %v1159_v22 }
  0x72   : > { %394 = vmatprep.subr.bf16.mxu0 %v1149_v20  ;;  %1027 = vmatprep.subr.bf16.mxu1 %v1160_v25 }
  0x75   : > { %395 = vmatpush1.bf16.msra.mxu0 %v1151_v21  ;;  %1028 = vmatpush3.bf16.msra.mxu1 %v1160_v25 }
  0x76   : > { %396 = vmatprep.subr.bf16.mxu0 %v1152_v23  ;;  %1029 = vmatprep.subr.bf16.mxu1 %v1161_v26 }
  0x79   : > { %397 = vmatpush1.bf16.msra.mxu0 %v1154_v24  ;;  %1030 = vmatpush3.bf16.msra.mxu1 %v1161_v26 }
  0x7a   : > { %1031 = vmatprep.subr.bf16.mxu1 %v1162_v29 }
  0x7c   : > { %415 = vmatmul.mubr.bf16.vlgmr.msra.gmra.mrb[0].mxu0 %v214_v15 }
  0x7d   : > { %424 = vmatprep.mubr.bf16.mxu0 %v1315_v0  ;;  %1032 = vmatpush3.bf16.msra.mxu1 %v1162_v29 }
  0x80   : > { %1034 = vmatmul.mubr.bf16.vlgmr.msra.gmra.mrb[0].mxu1 %v215_v30 }
  0x81   : > { %1037 = vmatprep.mubr.bf16.mxu1 %v216_v33 }
  0x84   : > { %425 = vmatmul.mubr.bf16.gmra.mrb[4].mxu0 %v215_v30 }
  0x85   : > { %434 = vmatprep.mubr.bf16.mxu0 %v1315_v0 }
  0x88   : > { %1038 = vmatmul.mubr.bf16.gmra.mrb[4].mxu1 %v217_v38 }
  0x89   : > { %1041 = vmatprep.mubr.bf16.mxu1 %v218_v39 }
  0x8c   : > { %435 = vmatmul.mubr.bf16.gmra.mrb[8].mxu0 %v216_v33 }
  0x8d   : > { %444 = vmatprep.mubr.bf16.mxu0 %v1315_v0 }
  0x90   : > { %1042 = vmatmul.mubr.bf16.gmra.mrb[8].mxu1 %v219_v44 }
  0x91   : > { %1045 = vmatprep.mubr.bf16.mxu1 %v220_v45 }
  0x94   : > { %445 = vmatmul.mubr.bf16.gmra.mrb[12].mxu0 %v217_v38 }
  0x95   : > { %454 = vmatprep.mubr.bf16.mxu0 %v1315_v0 }
  0x98   : > { %1046 = vmatmul.mubr.bf16.gmra.mrb[12].mxu1 %v221_v48 }
  0x9c   : > { %455 = vmatmul.mubr.bf16.gmra.mrb[16].mxu0 %v218_v39 }
  0x9d   : > { %464 = vmatprep.mubr.bf16.mxu0 %v1315_v0 }
  0xa4   : > { %465 = vmatmul.mubr.bf16.gmra.mrb[20].mxu0 %v219_v44 }
  0xa5   : > { %474 = vmatprep.mubr.bf16.mxu0 %v1315_v0 }
  0xac   : > { %475 = vmatmul.mubr.bf16.gmra.mrb[24].mxu0 %v220_v45 }
  0xad   : > { %484 = vmatprep.mubr.bf16.mxu0 %v1315_v0 }
  0xb4   : > { %485 = vmatmul.mubr.bf16.gmra.mrb[28].mxu0 %v221_v48 }
 0x14f   : > { %v416_v49 = vpop.f32.mrb[0].mxu0 }
 0x150   : > { %v418_v50 = vpop.f32.mrb[1].mxu0 }
 0x151   : > { %v969_v51 = vpack.c.bf16 %v418_v50, %v416_v49  ;;  %v420_v52 = vpop.f32.mrb[2].mxu0 }
 0x152   : > { %v422_v53 = vpop.f32.mrb[3].mxu0 }
 0x153   : > { %752 = vst [vmem:[%s1525_s19] sm:$0xff] %v969_v51  ;;  %v971_v54 = vpack.c.bf16 %v422_v53, %v420_v52  ;;  %v1035_v60 = vpop.f32.mrb[0].mxu1 }
 0x154   : > { %v974_v62 = vpack.c.bf16 %v1035_v60, %v1035_v60  ;;  %v529_v63 = vpop.f32.mrb[1].mxu1 }
 0x155   : > { %754 = vst [vmem:[%s1525_s19 + $0xc] sm:$0xff] %v971_v54  ;;  %v970_v0 = vpack.c.bf16 %v529_v63, %v529_v63  ;;  %v1036_v1 = vpop.f32.mrb[2].mxu1 }
 0x156   : > { %757 = vst [vmem:[%s1525_s19 + $0x20] sm:$0xf] %v974_v62  ;;  %v976_v2 = vpack.c.bf16 %v1036_v1, %v1036_v1  ;;  %v532_v3 = vpop.f32.mrb[3].mxu1 }
 0x157   : > { %v426_v55 = vpop.f32.mrb[4].mxu0  ;;  %753 = vst [vmem:[%s1525_s19 + $0x8] sm:$0xf] %v970_v0  ;;  %v972_v4 = vpack.c.bf16 %v532_v3, %v532_v3 }
 0x158   : > { %v428_v56 = vpop.f32.mrb[5].mxu0  ;;  %759 = vst [vmem:[%s1525_s19 + $0x2c] sm:$0xf] %v976_v2 }
 0x159   : > { %v973_v57 = vpack.c.bf16 %v428_v56, %v426_v55  ;;  %v430_v58 = vpop.f32.mrb[6].mxu0  ;;  %755 = vst [vmem:[%s1525_s19 + $0x14] sm:$0xf] %v972_v4 }
 0x15a   : > { %v432_v59 = vpop.f32.mrb[7].mxu0 }
 0x15b   : > { %756 = vst [vmem:[%s1525_s19 + $0x18] sm:$0xff] %v973_v57  ;;  %v975_v61 = vpack.c.bf16 %v432_v59, %v430_v58  ;;  %v1039_v10 = vpop.f32.mrb[4].mxu1 }
 0x15c   : > { %v982_v12 = vpack.c.bf16 %v1039_v10, %v1039_v10  ;;  %v545_v13 = vpop.f32.mrb[5].mxu1 }
 0x15d   : > { %758 = vst [vmem:[%s1525_s19 + $0x24] sm:$0xff] %v975_v61  ;;  %v978_v14 = vpack.c.bf16 %v545_v13, %v545_v13  ;;  %v1040_v15 = vpop.f32.mrb[6].mxu1 }
 0x15e   : > { %765 = vst [vmem:[%s1525_s19 + $0x50] sm:$0xf] %v982_v12  ;;  %v984_v16 = vpack.c.bf16 %v1040_v15, %v1040_v15  ;;  %v548_v17 = vpop.f32.mrb[7].mxu1 }
 0x15f   : > { %v436_v5 = vpop.f32.mrb[8].mxu0  ;;  %761 = vst [vmem:[%s1525_s19 + $0x38] sm:$0xf] %v978_v14  ;;  %v980_v18 = vpack.c.bf16 %v548_v17, %v548_v17 }
 0x160   : > { %v438_v6 = vpop.f32.mrb[9].mxu0  ;;  %767 = vst [vmem:[%s1525_s19 + $0x5c] sm:$0xf] %v984_v16 }
 0x161   : > { %v977_v7 = vpack.c.bf16 %v438_v6, %v436_v5  ;;  %v440_v8 = vpop.f32.mrb[10].mxu0  ;;  %763 = vst [vmem:[%s1525_s19 + $0x44] sm:$0xf] %v980_v18 }
 0x162   : > { %v442_v9 = vpop.f32.mrb[11].mxu0 }
 0x163   : > { %760 = vst [vmem:[%s1525_s19 + $0x30] sm:$0xff] %v977_v7  ;;  %v979_v11 = vpack.c.bf16 %v442_v9, %v440_v8  ;;  %v1043_v24 = vpop.f32.mrb[8].mxu1 }
 0x164   : > { %v990_v26 = vpack.c.bf16 %v1043_v24, %v1043_v24  ;;  %v561_v27 = vpop.f32.mrb[9].mxu1 }
 0x165   : > { %762 = vst [vmem:[%s1525_s19 + $0x3c] sm:$0xff] %v979_v11  ;;  %v986_v28 = vpack.c.bf16 %v561_v27, %v561_v27  ;;  %v1044_v29 = vpop.f32.mrb[10].mxu1 }
 0x166   : > { %773 = vst [vmem:[%s1525_s19 + $0x80] sm:$0xf] %v990_v26  ;;  %v992_v30 = vpack.c.bf16 %v1044_v29, %v1044_v29  ;;  %v564_v31 = vpop.f32.mrb[11].mxu1 }
 0x167   : > { %v446_v19 = vpop.f32.mrb[12].mxu0  ;;  %769 = vst [vmem:[%s1525_s19 + $0x68] sm:$0xf] %v986_v28  ;;  %v988_v32 = vpack.c.bf16 %v564_v31, %v564_v31 }
 0x168   : > { %v448_v20 = vpop.f32.mrb[13].mxu0  ;;  %775 = vst [vmem:[%s1525_s19 + $0x8c] sm:$0xf] %v992_v30 }
 0x169   : > { %v981_v21 = vpack.c.bf16 %v448_v20, %v446_v19  ;;  %v450_v22 = vpop.f32.mrb[14].mxu0  ;;  %771 = vst [vmem:[%s1525_s19 + $0x74] sm:$0xf] %v988_v32 }
 0x16a   : > { %v452_v23 = vpop.f32.mrb[15].mxu0 }
 0x16b   : > { %764 = vst [vmem:[%s1525_s19 + $0x48] sm:$0xff] %v981_v21  ;;  %v983_v25 = vpack.c.bf16 %v452_v23, %v450_v22  ;;  %v1047_v38 = vpop.f32.mrb[12].mxu1 }
 0x16c   : > { %v998_v40 = vpack.c.bf16 %v1047_v38, %v1047_v38  ;;  %v577_v41 = vpop.f32.mrb[13].mxu1 }
 0x16d   : > { %766 = vst [vmem:[%s1525_s19 + $0x54] sm:$0xff] %v983_v25  ;;  %v994_v42 = vpack.c.bf16 %v577_v41, %v577_v41  ;;  %v1048_v43 = vpop.f32.mrb[14].mxu1 }
 0x16e   : > { %781 = vst [vmem:[%s1525_s19 + $0xb0] sm:$0xf] %v998_v40  ;;  %v1000_v44 = vpack.c.bf16 %v1048_v43, %v1048_v43  ;;  %v580_v45 = vpop.f32.mrb[15].mxu1 }
 0x16f   : > { %v456_v33 = vpop.f32.mrb[16].mxu0  ;;  %777 = vst [vmem:[%s1525_s19 + $0x98] sm:$0xf] %v994_v42  ;;  %v996_v46 = vpack.c.bf16 %v580_v45, %v580_v45 }
 0x170   : > { %v458_v34 = vpop.f32.mrb[17].mxu0  ;;  %783 = vst [vmem:[%s1525_s19 + $0xbc] sm:$0xf] %v1000_v44 }
 0x171   : > { %v985_v35 = vpack.c.bf16 %v458_v34, %v456_v33  ;;  %v460_v36 = vpop.f32.mrb[18].mxu0  ;;  %779 = vst [vmem:[%s1525_s19 + $0xa4] sm:$0xf] %v996_v46 }
 0x172   : > { %v462_v37 = vpop.f32.mrb[19].mxu0 }
 0x173   : > { %768 = vst [vmem:[%s1525_s19 + $0x60] sm:$0xff] %v985_v35  ;;  %v987_v39 = vpack.c.bf16 %v462_v37, %v460_v36 }
 0x175   : > { %770 = vst [vmem:[%s1525_s19 + $0x6c] sm:$0xff] %v987_v39 }
 0x177   : > { %v466_v47 = vpop.f32.mrb[20].mxu0 }
 0x178   : > { %v468_v48 = vpop.f32.mrb[21].mxu0 }
 0x179   : > { %v989_v49 = vpack.c.bf16 %v468_v48, %v466_v47  ;;  %v470_v50 = vpop.f32.mrb[22].mxu0 }
 0x17a   : > { %v472_v51 = vpop.f32.mrb[23].mxu0 }
 0x17b   : > { %772 = vst [vmem:[%s1525_s19 + $0x78] sm:$0xff] %v989_v49  ;;  %v991_v52 = vpack.c.bf16 %v472_v51, %v470_v50 }
 0x17d   : > { %774 = vst [vmem:[%s1525_s19 + $0x84] sm:$0xff] %v991_v52 }
 0x17f   : > { %v476_v53 = vpop.f32.mrb[24].mxu0 }
 0x180   : > { %v478_v54 = vpop.f32.mrb[25].mxu0 }
 0x181   : > { %v993_v55 = vpack.c.bf16 %v478_v54, %v476_v53  ;;  %v480_v56 = vpop.f32.mrb[26].mxu0 }
 0x182   : > { %v482_v57 = vpop.f32.mrb[27].mxu0 }
 0x183   : > { %776 = vst [vmem:[%s1525_s19 + $0x90] sm:$0xff] %v993_v55  ;;  %v995_v58 = vpack.c.bf16 %v482_v57, %v480_v56 }
 0x185   : > { %778 = vst [vmem:[%s1525_s19 + $0x9c] sm:$0xff] %v995_v58 }
 0x187   : > { %v486_v59 = vpop.f32.mrb[28].mxu0 }
 0x188   : > { %v488_v60 = vpop.f32.mrb[29].mxu0 }
 0x189   : > { %v997_v61 = vpack.c.bf16 %v488_v60, %v486_v59  ;;  %v490_v62 = vpop.f32.mrb[30].mxu0 }
 0x18a   : > { %v492_v63 = vpop.f32.mrb[31].mxu0 }
 0x18b   : > { %780 = vst [vmem:[%s1525_s19 + $0xa8] sm:$0xff] %v997_v61  ;;  %v999_v0 = vpack.c.bf16 %v492_v63, %v490_v62 }
 0x18d   : > { %782 = vst [vmem:[%s1525_s19 + $0xb4] sm:$0xff] %v999_v0 }
 0x18e   : > { %1234 = shalt.err (!%p1231_p5)
}
 0x18f   : > { %s1235_s3 = scalar_lea.hbm %s1562_s7, 3072  ;;  %s1239_s16 = scalar_lea.hbm %s1617_s2, 6144 }
 0x190   : > { %p1236_p9 = scmp.ne.s32.totalorder %s1562_s7, %s1235_s3  ;;  %p1240_p3 = scmp.lt.u32.totalorder %s1562_s7, %s1617_s2 }
 0x191   : > { %p1241_p7 = scmp.lt.u32.totalorder %s1239_s16, %s1235_s3  ;;  %p1243_p4 = scmp.lt.u32.totalorder %s1235_s3, %s1562_s7 }
 0x192   : > { %p1237_p1 = pnand %p1236_p9, %p1430_p10 }
 0x193   : > { %p1242_p13 = por %p1241_p7, %p1240_p3 }
 0x194   : > { %p1238_p2 = pneg %p1237_p1 }
 0x195   : > { %p1244_p6 = por %p1243_p4, %p1242_p13 }
 0x197   : > { %p1245_p8 = pnand %p1244_p6, %p1238_p2 }
 0x199   : > { %1248 = shalt.err (!%p1245_p8)
}
 0x19a   : > { %s1317_s17 = smov 192   ;;  %s1318_s19 = smov 12  }
 0x19b   : > { %1057 = dma.vmem_to_hbm [thread:$0]  (%p1430_p10), %s1564_s4, 3072, %s1562_s7, %s785_s12, %s1317_s17, %s1317_s17, %s1318_s19  }
 0x19c PF: > { %s816_s21 = sand.u32 1, %s1287_s9   ;;  %p1635_p12 = scmp.ne.s32.totalorder %s1625_s20, 0 }
 0x19d   : > { %p1636_p11 = scmp.ge.s32.totalorder %s1307_s14, 2  ;;  %s817_s5 = scalar_lea.sflag [#allocation4], %s816_s21 }
 0x19f   : > { %p1068_p0 = pnand %p1636_p11, %p1635_p12 }
 0x1a1   : > { %1282 = dma.done.wait (!%p1068_p0), %s817_s5, 3072  }
 0x1a2   : > { %1284 = vsyncadd (!%p1068_p0), %s817_s5, 4294964224  ;;  %s19_s14 = sadd.s32 1, %s1307_s14   ;;  %s1637_s9 = smov %s1291_s10 }
 0x1a3   : > { %p16_p5 = scmp.ge.s32.totalorder %s19_s14, 4   ;;  %s1638_s10 = smov %s1295_s11 }
 0x1a4   : > { %s1639_s11 = smov %s1439_s28  ;;  %s1640_s12 = smov %s1303_s13 }
 0x1a5   : > { %s1641_s13 = smov %s1643_s25  ;;  %18 = sbr.rel (!%p16_p5) target bundleno = 7 (0x7), region = 77 }
 0x1ac   :  { %822 = vsyncpa [#allocation3], 1 }
 0x1ad   :  { %824 = vsyncpa [#allocation3 + $0x1], 1 }
 0x1ae   :  { %825 = vsyncpa [#allocation6], 1 }
 0x1af   :  { %826 = vsyncpa [#allocation4], 1 }
 0x1b0   :  { %828 = vsyncpa [#allocation4 + $0x1], 1 }

</bundles_post_ra>
